<compile_context>
chip_gen: v5e
topology: v5e:2x2
jax: 0.10.0
libtpu: 0.0.40
codegen_flags: <defaults>
</compile_context>

<pallas_src>
import functools

import jax
import jax.numpy as jnp
from jax.experimental import pallas as pl
from jax.experimental.pallas import tpu as pltpu


def _mlp_two_prong_kernel(d_out, x_ref, *refs):
    """Transposed MLP: everything is [features, batch_tile] (batch on lanes).

    refs = [w0, b0, w1, b1, ..., w_heads, b_heads, out_ref]
      w_l      : (out_l, in_l)   PyTorch layout, used directly as lhs.
      b_l      : (out_l, 1)      broadcast over the batch (lane) axis.
      w_heads  : (2*d_out, d_hidden)  = [W_mu ; W_logsigma]
      out_ref  : (2*d_out, tile_m)    = [muᵀ ; sigmaᵀ], lane-dense store.
    """
    out_ref = refs[-1]
    wrefs = refs[:-1]
    n_hidden = (len(wrefs) - 2) // 2

    h = x_ref[...]                                      # (d_in, tile_m)
    for l in range(n_hidden):
        w = wrefs[2 * l][...]
        b = wrefs[2 * l + 1][...]
        # (out_l, in_l) @ (in_l, tile_m) -> (out_l, tile_m); N = tile_m fills lanes.
        h = jnp.tanh(
            jnp.dot(w, h, preferred_element_type=jnp.float32) + b
        )

    # Fused heads: one matmul -> (2*d_out, tile_m) = [muᵀ ; logsigmaᵀ].
    heads = (
        jnp.dot(wrefs[-2][...], h, preferred_element_type=jnp.float32)
        + wrefs[-1][...]
    )

    # exp only on the logsigma half; both stores are lane-dense (tile_m wide)
    # and the row split at d_out (multiple of 8 here) is a sublane boundary.
    out_ref[:d_out, :] = heads[:d_out, :].astype(out_ref.dtype)
    out_ref[d_out:, :] = jnp.exp(heads[d_out:, :]).astype(out_ref.dtype)


def mlp_two_prong(x, params, *, tile_m=512):
    """Forward pass of MLPTwoProng (non_linearity = tanh).

    x: (B, d_in) f32.  params: see init_params.  Returns (mu, sigma), (B, d_out).
    """
    B, d_in = x.shape
    d_out = params["w_mu"].shape[0]

    weight_args = []
    for w, b in params["hidden"]:
        weight_args += [w, b]
    weight_args += [params["w_heads"], params["b_heads"]]  # fused, precomputed

    # One big row tile; cdiv handles ragged batches while keeping the block
    # lane-dense (tile_m is either a multiple of 128 or the full batch).
    tile_m = min(tile_m, B)
    grid = (pl.cdiv(B, tile_m),)

    # Batch onto the lane axis for the whole pipeline (cheap XLA plumbing;
    # callers that already hold x transposed can skip this copy).
    x_t = x.T                                            # (d_in, B)

    in_specs = [pl.BlockSpec((d_in, tile_m), lambda i: (0, i))]
    for a in weight_args:
        # Full block, constant index -> DMA'd once, VMEM-resident across steps.
        in_specs.append(pl.BlockSpec(a.shape, lambda i: (0, 0)))
    out_specs = pl.BlockSpec((2 * d_out, tile_m), lambda i: (0, i))

    # Advisory cost estimate.
    flops = 0
    prev = d_in
    for w, _ in params["hidden"]:
        flops += 2 * B * prev * w.shape[0]
        prev = w.shape[0]
    flops += 2 * B * prev * (2 * d_out)
    transcendentals = B * (sum(w.shape[0] for w, _ in params["hidden"]) + d_out)
    bytes_accessed = 4 * (
        int(x.size) + sum(int(a.size) for a in weight_args) + B * 2 * d_out
    )

    fused_t = pl.pallas_call(
        functools.partial(_mlp_two_prong_kernel, d_out),
        out_shape=jax.ShapeDtypeStruct((2 * d_out, B), jnp.float32),
        grid=grid,
        in_specs=in_specs,
        out_specs=out_specs,
        compiler_params=pltpu.CompilerParams(
            # Only pays off on multi-TC parts when there are >=2 substantial
            # row tiles; harmless (no-op) at grid=(1,) and on 1-TC parts.
            dimension_semantics=("parallel",),
            # vmem_limit_bytes: not needed at these dims; set for scaled dims
            # (esp. v7x, 64 MiB physical / 32 MiB default scoped VMEM).
        ),
        cost_estimate=pl.CostEstimate(
            flops=flops,
            transcendentals=transcendentals,
            bytes_accessed=bytes_accessed,
        ),
    )(x_t, *weight_args)

    # Wrapper-side split + transpose back to (B, d_out): free XLA plumbing.
    mu = fused_t[:d_out, :].T
    sigma = fused_t[d_out:, :].T
    return mu, sigma


def init_params(key, dims):
    """Deterministic synthetic init matching nn.Linear's uniform(-1/sqrt(in), ..).

    Weights are stored in PyTorch layout (out_dim, in_dim), biases as (out_dim, 1).
    The fused head weights [W_mu ; W_logsigma] are precomputed here (hoisted out
    of the per-call wrapper).
    """
    n_hidden = len(dims) - 2
    ks = jax.random.split(key, 2 * (n_hidden + 2))
    ki = 0

    hidden = []
    for din, dout in zip(dims[:-2], dims[1:-1]):
        scale = 1.0 / jnp.sqrt(din)
        w = jax.random.uniform(ks[ki], (dout, din), jnp.float32, -scale, scale)
        b = jax.random.uniform(ks[ki + 1], (dout, 1), jnp.float32, -scale, scale)
        hidden.append((w, b))
        ki += 2

    din, dout = dims[-2], dims[-1]
    scale = 1.0 / jnp.sqrt(din)
    w_mu = jax.random.uniform(ks[ki], (dout, din), jnp.float32, -scale, scale)
    b_mu = jax.random.uniform(ks[ki + 1], (dout, 1), jnp.float32, -scale, scale)
    w_ls = jax.random.uniform(ks[ki + 2], (dout, din), jnp.float32, -scale, scale)
    b_ls = jax.random.uniform(ks[ki + 3], (dout, 1), jnp.float32, -scale, scale)

    return {
        "hidden": hidden,
        "w_mu": w_mu, "b_mu": b_mu,
        "w_logsigma": w_ls, "b_logsigma": b_ls,
        # fused heads, built once at setup
        "w_heads": jnp.concatenate([w_mu, w_ls], axis=0),
        "b_heads": jnp.concatenate([b_mu, b_ls], axis=0),
    }


def mlp_two_prong_ref(x, p):
    h = x
    for w, b in p["hidden"]:
        h = jnp.tanh(h @ w.T + b[:, 0])
    mu = h @ p["w_mu"].T + p["b_mu"][:, 0]
    sig = jnp.exp(h @ p["w_logsigma"].T + p["b_logsigma"][:, 0])
    return mu, sig


if __name__ == "__main__":
    dims = [16, 32, 32, 8]   # dims[0]=input, two hidden layers, dims[-1]=output
    batch = 256              # fits in ONE lane-dense grid step (tile_m=256)

    key = jax.random.PRNGKey(0)
    k_x, k_p = jax.random.split(key)
    x = jax.random.normal(k_x, (batch, dims[0]), jnp.float32)
    params = init_params(k_p, dims)

    mu, sig = mlp_two_prong(x, params)
    mu, sig = jax.block_until_ready((mu, sig))

    mu_ref, sig_ref = mlp_two_prong_ref(x, params)
    assert mu.shape == (batch, dims[-1]) and sig.shape == (batch, dims[-1])
    assert jnp.allclose(mu, mu_ref, atol=1e-4, rtol=1e-4)
    assert jnp.allclose(sig, sig_ref, atol=1e-4, rtol=1e-4)
    assert bool(jnp.all(sig > 0.0))

    print("KERNEL_OK")
</pallas_src>

<mosaic_0001>
module attributes {stable_mosaic.version = 11 : i64} {
  func.func @_mlp_two_prong_kernel(%arg0: i32, %arg1: memref<16x256xf32, #tpu.memory_space<vmem>>, %arg2: memref<32x16xf32, #tpu.memory_space<vmem>>, %arg3: memref<32x1xf32, #tpu.memory_space<vmem>>, %arg4: memref<32x32xf32, #tpu.memory_space<vmem>>, %arg5: memref<32x1xf32, #tpu.memory_space<vmem>>, %arg6: memref<16x32xf32, #tpu.memory_space<vmem>>, %arg7: memref<16x1xf32, #tpu.memory_space<vmem>>, %arg8: memref<16x256xf32, #tpu.memory_space<vmem>>) attributes {dimension_semantics = [#tpu.dimension_semantics<parallel>], iteration_bounds = array<i64: 1>, scalar_prefetch = 0 : i64, scratch_operands = 0 : i64, tpu.core_type = #tpu.core_type<tc>, window_params = [{transform_indices = @transform_0, window_bounds = array<i64: 16, 256>}, {pipeline_mode = #tpu.pipeline_mode<synchronous>, transform_indices = @transform_1, window_bounds = array<i64: 32, 16>}, {pipeline_mode = #tpu.pipeline_mode<synchronous>, transform_indices = @transform_2, window_bounds = array<i64: 32, 1>}, {pipeline_mode = #tpu.pipeline_mode<synchronous>, transform_indices = @transform_3, window_bounds = array<i64: 32, 32>}, {pipeline_mode = #tpu.pipeline_mode<synchronous>, transform_indices = @transform_4, window_bounds = array<i64: 32, 1>}, {pipeline_mode = #tpu.pipeline_mode<synchronous>, transform_indices = @transform_5, window_bounds = array<i64: 16, 32>}, {pipeline_mode = #tpu.pipeline_mode<synchronous>, transform_indices = @transform_6, window_bounds = array<i64: 16, 1>}, {transform_indices = @transform_7, window_bounds = array<i64: 16, 256>}]} {
    %c0 = arith.constant 0 : index
    %c0_0 = arith.constant 0 : index
    %0 = vector.load %arg1[%c0, %c0_0] : memref<16x256xf32, #tpu.memory_space<vmem>>, vector<16x256xf32>
    %c0_1 = arith.constant 0 : index
    %c0_2 = arith.constant 0 : index
    %1 = vector.load %arg2[%c0_1, %c0_2] : memref<32x16xf32, #tpu.memory_space<vmem>>, vector<32x16xf32>
    %c0_3 = arith.constant 0 : index
    %c0_4 = arith.constant 0 : index
    %2 = vector.load %arg3[%c0_3, %c0_4] : memref<32x1xf32, #tpu.memory_space<vmem>>, vector<32x1xf32>
    %cst = arith.constant dense<0.000000e+00> : vector<32x256xf32>
    %3 = tpu.matmul %1, %0, %cst {dimension_numbers = #tpu.dot_dimension_numbers<[1], [0], [0], [1], [0, 0, 1, 1], [], []>} : vector<32x16xf32>, vector<16x256xf32>, vector<32x256xf32> -> vector<32x256xf32>
    %4 = vector.broadcast %2 : vector<32x1xf32> to vector<32x256xf32>
    %5 = arith.addf %3, %4 : vector<32x256xf32>
    %6 = math.tanh %5 : vector<32x256xf32>
    %c0_5 = arith.constant 0 : index
    %c0_6 = arith.constant 0 : index
    %7 = vector.load %arg4[%c0_5, %c0_6] : memref<32x32xf32, #tpu.memory_space<vmem>>, vector<32x32xf32>
    %c0_7 = arith.constant 0 : index
    %c0_8 = arith.constant 0 : index
    %8 = vector.load %arg5[%c0_7, %c0_8] : memref<32x1xf32, #tpu.memory_space<vmem>>, vector<32x1xf32>
    %cst_9 = arith.constant dense<0.000000e+00> : vector<32x256xf32>
    %9 = tpu.matmul %7, %6, %cst_9 {dimension_numbers = #tpu.dot_dimension_numbers<[1], [0], [0], [1], [0, 0, 1, 1], [], []>} : vector<32x32xf32>, vector<32x256xf32>, vector<32x256xf32> -> vector<32x256xf32>
    %10 = vector.broadcast %8 : vector<32x1xf32> to vector<32x256xf32>
    %11 = arith.addf %9, %10 : vector<32x256xf32>
    %12 = math.tanh %11 : vector<32x256xf32>
    %c0_10 = arith.constant 0 : index
    %c0_11 = arith.constant 0 : index
    %13 = vector.load %arg6[%c0_10, %c0_11] : memref<16x32xf32, #tpu.memory_space<vmem>>, vector<16x32xf32>
    %cst_12 = arith.constant dense<0.000000e+00> : vector<16x256xf32>
    %14 = tpu.matmul %13, %12, %cst_12 {dimension_numbers = #tpu.dot_dimension_numbers<[1], [0], [0], [1], [0, 0, 1, 1], [], []>} : vector<16x32xf32>, vector<32x256xf32>, vector<16x256xf32> -> vector<16x256xf32>
    %c0_13 = arith.constant 0 : index
    %c0_14 = arith.constant 0 : index
    %15 = vector.load %arg7[%c0_13, %c0_14] : memref<16x1xf32, #tpu.memory_space<vmem>>, vector<16x1xf32>
    %16 = vector.broadcast %15 : vector<16x1xf32> to vector<16x256xf32>
    %17 = arith.addf %14, %16 : vector<16x256xf32>
    %18 = vector.extract_strided_slice %17 {offsets = [0, 0], sizes = [8, 256], strides = [1, 1]} : vector<16x256xf32> to vector<8x256xf32>
    %c0_15 = arith.constant 0 : index
    %c0_16 = arith.constant 0 : index
    %19 = vector.load %arg8[%c0_15, %c0_16] : memref<16x256xf32, #tpu.memory_space<vmem>>, vector<8x256xf32>
    tpu.vector_store %arg8[%c0_15, %c0_16], %18 {strides = array<i32>} : memref<16x256xf32, #tpu.memory_space<vmem>>, vector<8x256xf32>,
    %20 = vector.extract_strided_slice %17 {offsets = [8, 0], sizes = [8, 256], strides = [1, 1]} : vector<16x256xf32> to vector<8x256xf32>
    %21 = math.exp %20 : vector<8x256xf32>
    %c8 = arith.constant 8 : index
    %c0_17 = arith.constant 0 : index
    %22 = vector.load %arg8[%c8, %c0_17] : memref<16x256xf32, #tpu.memory_space<vmem>>, vector<8x256xf32>
    tpu.vector_store %arg8[%c8, %c0_17], %21 {strides = array<i32>} : memref<16x256xf32, #tpu.memory_space<vmem>>, vector<8x256xf32>,
    return
  }
  func.func @transform_0(%arg0: i32) -> (i32, i32) {
    %c0_i32 = arith.constant 0 : i32
    %c0_i32_0 = arith.constant 0 : i32
    return %c0_i32, %arg0 : i32, i32
  }
  func.func @transform_1(%arg0: i32) -> (i32, i32) {
    %c0_i32 = arith.constant 0 : i32
    %c0_i32_0 = arith.constant 0 : i32
    %c0_i32_1 = arith.constant 0 : i32
    return %c0_i32, %c0_i32_0 : i32, i32
  }
  func.func @transform_2(%arg0: i32) -> (i32, i32) {
    %c0_i32 = arith.constant 0 : i32
    %c0_i32_0 = arith.constant 0 : i32
    %c0_i32_1 = arith.constant 0 : i32
    return %c0_i32, %c0_i32_0 : i32, i32
  }
  func.func @transform_3(%arg0: i32) -> (i32, i32) {
    %c0_i32 = arith.constant 0 : i32
    %c0_i32_0 = arith.constant 0 : i32
    %c0_i32_1 = arith.constant 0 : i32
    return %c0_i32, %c0_i32_0 : i32, i32
  }
  func.func @transform_4(%arg0: i32) -> (i32, i32) {
    %c0_i32 = arith.constant 0 : i32
    %c0_i32_0 = arith.constant 0 : i32
    %c0_i32_1 = arith.constant 0 : i32
    return %c0_i32, %c0_i32_0 : i32, i32
  }
  func.func @transform_5(%arg0: i32) -> (i32, i32) {
    %c0_i32 = arith.constant 0 : i32
    %c0_i32_0 = arith.constant 0 : i32
    %c0_i32_1 = arith.constant 0 : i32
    return %c0_i32, %c0_i32_0 : i32, i32
  }
  func.func @transform_6(%arg0: i32) -> (i32, i32) {
    %c0_i32 = arith.constant 0 : i32
    %c0_i32_0 = arith.constant 0 : i32
    %c0_i32_1 = arith.constant 0 : i32
    return %c0_i32, %c0_i32_0 : i32, i32
  }
  func.func @transform_7(%arg0: i32) -> (i32, i32) {
    %c0_i32 = arith.constant 0 : i32
    %c0_i32_0 = arith.constant 0 : i32
    return %c0_i32, %arg0 : i32, i32
  }
}

</mosaic_0001>

<bundles_post_ra>
// kernel: tpu_custom_call.1
= control target key start
LH: loop header
LB: loop body
LE: loop exit
PB: predicated region body
PF: predicated region fallthrough
CT: control target
= control target key end

     0   :  { %vm59_vm0 = vcmask 130048   ;;  %v434_v5 = vmov 0   ;;  %s573_s0 = inlined_call_operand.vmem [shape: f32[16,256], index: 0, kind: input, shape index: {}]   ;;  %s574_s1 = inlined_call_operand.vmem [shape: f32[32,16], index: 1, kind: input, shape index: {}]   ;;  %s575_s2 = inlined_call_operand.vmem [shape: f32[32,1], index: 2, kind: input, shape index: {}]   ;;  %s576_s3 = inlined_call_operand.vmem [shape: f32[32,32], index: 3, kind: input, shape index: {}]   ;;  %s577_s4 = inlined_call_operand.vmem [shape: f32[32,1], index: 4, kind: input, shape index: {}]   ;;  %s578_s5 = inlined_call_operand.vmem [shape: f32[16,32], index: 5, kind: input, shape index: {}]   ;;  %s579_s6 = inlined_call_operand.vmem [shape: f32[16,1], index: 6, kind: input, shape index: {}]   ;;  %s580_s7 = inlined_call_operand.hbm [shape: f32[16,256], index: 7, kind: output, shape index: {}]  }
   0x1   :  { %v29_v0 = vld [vmem:[%s573_s0 + $0x10] sm:$0xff]  ;;  %v30_v1 = vld [vmem:[%s573_s0 + $0x18] sm:$0xff]  ;;  %v27_v2 = vld [vmem:[%s573_s0] sm:$0xff]  ;;  %370 = vset.pattern.permute.xlu1 %v434_v5  ;;  %369 = vset.pattern.permute.xlu0 %v434_v5 }
   0x2   :  { %86 = vmatpush.msra.mxu0 %v29_v0  ;;  %115 = vmatpush.msra.mxu1 %v30_v1  ;;  %v28_v3 = vld [vmem:[%s573_s0 + $0x8] sm:$0xff]  ;;  %v31_v4 = vld [vmem:[%s574_s1] sm:$0xff]  ;;  %v38_v7 = vld [vmem:[%s575_s2 + $0x18] sm:$0xff] }
   0x3   :  { %v36_v6 = vld [vmem:[%s575_s2 + $0x8] sm:$0xff]  ;;  %56 = vperm.xlu0 %369, %v38_v7  }
   0x4   :  { %87 = vmatpush.msra.mxu0 %v27_v2  ;;  %116 = vmatpush.msra.mxu1 %v28_v3 }
   0x5   :  { %337 = vmatmul.msk.f32.vlgmr.msra.gmra.mxu0 %vm59_vm0, %v31_v4  ;;  %341 = vmatmul.msk.f32.vlgmr.msra.gmra.mxu1 %vm59_vm0, %v31_v4 }
   0x6   :  { %46 = vperm.xlu1 %370, %v36_v6  }
   0x7   :  { %12 = vsyncpa [#allocation3], 0  ;;  %371 = vset.pattern.permute.xlu2 %v434_v5  ;;  %v32_v8 = vld [vmem:[%s574_s1 + $0x8] sm:$0xff]  ;;  %v35_v9 = vld [vmem:[%s575_s2] sm:$0xff]  ;;  %vm166_vm1 = vcmask 261120   ;;  %s325_s22 = sshll.u32 %s580_s7, 4  ;;  %s326_s22 = int_to_ptr.hbm [resolvable:$true] %s325_s22 }
   0x8   :  { %v37_v10 = vld [vmem:[%s575_s2 + $0x10] sm:$0xff]  ;;  %v143_v12 = vld [vmem:[%s577_s4 + $0x8] sm:$0xff]  ;;  %v142_v13 = vld [vmem:[%s577_s4] sm:$0xff]  ;;  %s436_s23 = smov 256   ;;  %s437_s24 = smov 16  }
   0x9   :  { %v33_v11 = vld [vmem:[%s574_s1 + $0x10] sm:$0xff]  ;;  %v34_v14 = vld [vmem:[%s574_s1 + $0x18] sm:$0xff]  ;;  %v247_v15 = vld [vmem:[%s579_s6] sm:$0xff] }
   0xa   :  { %v145_v38 = vld [vmem:[%s577_s4 + $0x18] sm:$0xff]  ;;  %v138_v43 = vld [vmem:[%s576_s3] sm:$0xff]  ;;  %v144_v46 = vld [vmem:[%s577_s4 + $0x10] sm:$0xff] }
   0xb   :  { %51 = vperm.xlu0 %369, %v37_v10   ;;  %163 = vperm.xlu2 %371, %v145_v38   ;;  %v139_v47 = vld [vmem:[%s576_s3 + $0x8] sm:$0xff]  ;;  %v140_v49 = vld [vmem:[%s576_s3 + $0x10] sm:$0xff]  ;;  %v141_v50 = vld [vmem:[%s576_s3 + $0x18] sm:$0xff] }
   0xc   :  { %v248_v48 = vld [vmem:[%s579_s6 + $0x8] sm:$0xff] }
   0xd   :  { %338 = vmatmul.msk.f32.gmra.mxu0 %vm59_vm0, %v32_v8  ;;  %342 = vmatmul.msk.f32.gmra.mxu1 %vm59_vm0, %v32_v8 }
   0xe   :  { %41 = vperm.xlu1 %370, %v35_v9  }
  0x13   :  { %153 = vperm.xlu0 %369, %v143_v12   ;;  %158 = vperm.xlu2 %371, %v144_v46  }
  0x15   :  { %339 = vmatmul.msk.f32.gmra.mxu0 %vm59_vm0, %v33_v11  ;;  %343 = vmatmul.msk.f32.gmra.mxu1 %vm59_vm0, %v33_v11 }
  0x16   :  { %148 = vperm.xlu1 %370, %v142_v13  }
  0x1b   :  { %251 = vperm.xlu0 %369, %v247_v15   ;;  %256 = vperm.xlu2 %371, %v248_v48   ;;  %v246_v15 = vld [vmem:[%s578_s5 + $0x8] sm:$0xff] }
  0x1d   :  { %340 = vmatmul.msk.f32.gmra.mxu0 %vm59_vm0, %v34_v14  ;;  %344 = vmatmul.msk.f32.gmra.mxu1 %vm59_vm0, %v34_v14  ;;  %v245_v14 = vld [vmem:[%s578_s5] sm:$0xff]  ;;  %s435_s5 = smov [#allocation2]  }
  0x1e   :  { %s323_s19 = sshll.u32 %s435_s5, 4  ;;  %s324_s19 = int_to_ptr.vmem [resolvable:$true] %s323_s19 }
  0x65   :  { %v164_v55 = vpop.permute.xlu2 %163 }
  0x6d   :  { %v159_v58 = vpop.permute.xlu2 %158 }
  0x75   :  { %v57_v20 = vpop.permute.xlu0 %56 }
  0x78   :  { %v47_v21 = vpop.permute.xlu1 %46 }
  0x7d   :  { %v52_v24 = vpop.permute.xlu0 %51 }
  0x80   :  { %v42_v30 = vpop.permute.xlu1 %41 }
  0x82   :  { %v89_v16 = vpop.f32.mrf.mxu0  ;;  %v118_v17 = vpop.f32.mrf.mxu1 }
  0x83   :  { %v90_v34 = vadd.f32 %v89_v16, %v42_v30  ;;  %v119_v35 = vadd.f32 %v118_v17, %v42_v30 }
  0x85   :  { %v154_v63 = vpop.permute.xlu0 %153 }
  0x88   :  { %v149_v3 = vpop.permute.xlu1 %148 }
  0x8a   :  { %v92_v18 = vpop.f32.mrf.mxu0  ;;  %v121_v19 = vpop.f32.mrf.mxu1 }
  0x8b   :  { %v93_v32 = vadd.f32 %v92_v18, %v47_v21  ;;  %v122_v33 = vadd.f32 %v121_v19, %v47_v21 }
  0x8d   :  { %v252_v17 = vpop.permute.xlu0 %251 }
  0x92   :  { %v95_v22 = vpop.f32.mrf.mxu0  ;;  %v124_v23 = vpop.f32.mrf.mxu1 }
  0x93   :  { %v96_v27 = vadd.f32 %v95_v22, %v52_v24  ;;  %v125_v31 = vadd.f32 %v124_v23, %v52_v24  ;;  %v257_v22 = vpop.permute.xlu2 %256 }
  0x9a   :  { %v98_v25 = vpop.f32.mrf.mxu0  ;;  %v127_v26 = vpop.f32.mrf.mxu1 }
  0x9b   :  { %v99_v28 = vadd.f32 %v98_v25, %v57_v20  ;;  %v128_v29 = vadd.f32 %v127_v26, %v57_v20 }
  0x9d   :  { %372 = vtanh.f32 %v99_v28 }
  0x9e   :  { %374 = vtanh.f32 %v128_v29 }
  0x9f   :  { %376 = vtanh.f32 %v96_v27 }
  0xa0   :  { %378 = vtanh.f32 %v125_v31 }
  0xa1   :  { %380 = vtanh.f32 %v93_v32 }
  0xa2   :  { %382 = vtanh.f32 %v122_v33 }
  0xa3   :  { %v373_v36 = vpop.eup %372  ;;  %384 = vtanh.f32 %v90_v34 }
  0xa4   :  { %v375_v37 = vpop.eup %374  ;;  %386 = vtanh.f32 %v119_v35  ;;  %191 = vmatpush.msra.mxu2 %v373_v36 }
  0xa5   :  { %v377_v39 = vpop.eup %376  ;;  %220 = vmatpush.msra.mxu3 %v375_v37 }
  0xa6   :  { %v379_v40 = vpop.eup %378  ;;  %192 = vmatpush.msra.mxu2 %v377_v39 }
  0xa7   :  { %v381_v41 = vpop.eup %380  ;;  %221 = vmatpush.msra.mxu3 %v379_v40 }
  0xa8   :  { %v383_v42 = vpop.eup %382  ;;  %193 = vmatpush.msra.mxu2 %v381_v41 }
  0xa9   :  { %v385_v44 = vpop.eup %384  ;;  %222 = vmatpush.msra.mxu3 %v383_v42 }
  0xaa   :  { %v387_v45 = vpop.eup %386  ;;  %194 = vmatpush.msra.mxu2 %v385_v44 }
  0xab   :  { %223 = vmatpush.msra.mxu3 %v387_v45  ;;  %345 = vmatmul.msk.f32.vlgmr.msra.gmra.mxu2 %vm166_vm1, %v138_v43 }
  0xac   :  { %349 = vmatmul.msk.f32.vlgmr.msra.gmra.mxu3 %vm166_vm1, %v138_v43 }
  0xb3   :  { %346 = vmatmul.msk.f32.gmra.mxu2 %vm166_vm1, %v139_v47 }
  0xb4   :  { %350 = vmatmul.msk.f32.gmra.mxu3 %vm166_vm1, %v139_v47 }
  0xbb   :  { %347 = vmatmul.msk.f32.gmra.mxu2 %vm166_vm1, %v140_v49 }
  0xbc   :  { %351 = vmatmul.msk.f32.gmra.mxu3 %vm166_vm1, %v140_v49 }
  0xc3   :  { %348 = vmatmul.msk.f32.gmra.mxu2 %vm166_vm1, %v141_v50 }
  0xc4   :  { %352 = vmatmul.msk.f32.gmra.mxu3 %vm166_vm1, %v141_v50 }
 0x12e   :  { %v196_v51 = vpop.f32.mrf.mxu2 }
 0x12f   :  { %v225_v52 = vpop.f32.mrf.mxu3  ;;  %v197_v5 = vadd.f32 %v196_v51, %v149_v3 }
 0x130   :  { %v226_v6 = vadd.f32 %v225_v52, %v149_v3 }
 0x136   :  { %v199_v53 = vpop.f32.mrf.mxu2 }
 0x137   :  { %v228_v54 = vpop.f32.mrf.mxu3  ;;  %v200_v2 = vadd.f32 %v199_v53, %v154_v63 }
 0x138   :  { %v229_v4 = vadd.f32 %v228_v54, %v154_v63 }
 0x13e   :  { %v202_v56 = vpop.f32.mrf.mxu2 }
 0x13f   :  { %v231_v57 = vpop.f32.mrf.mxu3  ;;  %v203_v60 = vadd.f32 %v202_v56, %v159_v58 }
 0x140   :  { %v232_v0 = vadd.f32 %v231_v57, %v159_v58 }
 0x146   :  { %v205_v59 = vpop.f32.mrf.mxu2 }
 0x147   :  { %v206_v61 = vadd.f32 %v205_v59, %v164_v55  ;;  %v234_v62 = vpop.f32.mrf.mxu3 }
 0x148   :  { %v235_v1 = vadd.f32 %v234_v62, %v164_v55 }
 0x149   :  { %388 = vtanh.f32 %v206_v61 }
 0x14a   :  { %390 = vtanh.f32 %v235_v1 }
 0x14b   :  { %392 = vtanh.f32 %v203_v60 }
 0x14c   :  { %394 = vtanh.f32 %v232_v0 }
 0x14d   :  { %396 = vtanh.f32 %v200_v2 }
 0x14e   :  { %398 = vtanh.f32 %v229_v4 }
 0x14f   :  { %v389_v7 = vpop.eup %388  ;;  %400 = vtanh.f32 %v197_v5 }
 0x150   :  { %v391_v8 = vpop.eup %390  ;;  %402 = vtanh.f32 %v226_v6  ;;  %277 = vmatpush.msrb.mxu0 %v389_v7  ;;  %357 = vmatpush.msrb.mxu2 %v389_v7 }
 0x151   :  { %v393_v9 = vpop.eup %392  ;;  %300 = vmatpush.msrb.mxu1 %v391_v8  ;;  %361 = vmatpush.msrb.mxu3 %v391_v8 }
 0x152   :  { %v395_v10 = vpop.eup %394  ;;  %278 = vmatpush.msrb.mxu0 %v393_v9  ;;  %358 = vmatpush.msrb.mxu2 %v393_v9 }
 0x153   :  { %v397_v11 = vpop.eup %396  ;;  %301 = vmatpush.msrb.mxu1 %v395_v10  ;;  %362 = vmatpush.msrb.mxu3 %v395_v10 }
 0x154   :  { %v399_v12 = vpop.eup %398  ;;  %279 = vmatpush.msrb.mxu0 %v397_v11  ;;  %359 = vmatpush.msrb.mxu2 %v397_v11 }
 0x155   :  { %v401_v13 = vpop.eup %400  ;;  %302 = vmatpush.msrb.mxu1 %v399_v12  ;;  %363 = vmatpush.msrb.mxu3 %v399_v12 }
 0x156   :  { %v403_v16 = vpop.eup %402  ;;  %280 = vmatpush.msrb.mxu0 %v401_v13  ;;  %360 = vmatpush.msrb.mxu2 %v401_v13 }
 0x157   :  { %303 = vmatpush.msrb.mxu1 %v403_v16  ;;  %364 = vmatpush.msrb.mxu3 %v403_v16 }
 0x158   :  { %353 = vmatmul.msk.f32.vlgmr.msrb.gmra.mxu0 %vm166_vm1, %v245_v14  ;;  %354 = vmatmul.msk.f32.vlgmr.msrb.gmra.mxu2 %vm166_vm1, %v246_v15 }
 0x159   :  { %355 = vmatmul.msk.f32.vlgmr.msrb.gmra.mxu1 %vm166_vm1, %v245_v14  ;;  %356 = vmatmul.msk.f32.vlgmr.msrb.gmra.mxu3 %vm166_vm1, %v246_v15 }
 0x1d5   :  { %v282_v18 = vpop.f32.mrf.mxu0 }
 0x1d6   :  { %v283_v19 = vadd.f32 %v282_v18, %v252_v17  ;;  %v305_v20 = vpop.f32.mrf.mxu1 }
 0x1d7   :  { %v306_v21 = vadd.f32 %v305_v20, %v252_v17 }
 0x1d8   :  { %311 = vst [vmem:[#allocation2] sm:$0xff] %v283_v19 }
 0x1d9   :  { %312 = vst [vmem:[#allocation2 + $0x8] sm:$0xff] %v306_v21 }
 0x1db   :  { %v285_v23 = vpop.f32.mrf.mxu2 }
 0x1dc   :  { %v286_v24 = vadd.f32 %v285_v23, %v257_v22  ;;  %v308_v25 = vpop.f32.mrf.mxu3 }
 0x1dd   :  { %v309_v26 = vadd.f32 %v308_v25, %v257_v22 }
 0x1de   :  { %v313_v27 = vmul.f32 1.442695, %v286_v24 }
 0x1df   :  { %v315_v28 = vmul.f32 1.442695, %v309_v26 }
 0x1e0   :  { %404 = vpow2.f32 %v313_v27 }
 0x1e1   :  { %406 = vpow2.f32 %v315_v28 }
 0x1e6   :  { %v405_v29 = vpop.eup %404 }
 0x1e7   :  { %v407_v30 = vpop.eup %406  ;;  %317 = vst [vmem:[#allocation2 + $0x10] sm:$0xff] %v405_v29 }
 0x1e8   :  { %318 = vst [vmem:[#allocation2 + $0x18] sm:$0xff] %v407_v30 }
 0x1e9   :  { %331 = dma.vmem_to_hbm [thread:$0]  %s324_s19, 512, %s326_s22, [#allocation3], %s436_s23, %s436_s23, %s437_s24  }
 0x1ea   :  { %432 = dma.done.wait [#allocation3], 512  }
 0x1eb   :  { %433 = vsyncadd [#allocation3], 4294966784 }
 0x1ec   :  { %336 = vsyncpa [#allocation3], 1 }

</bundles_post_ra>
